<compile_context>
chip_gen: v5e
topology: v5e:2x2
jax: 0.10.0
libtpu: 0.0.40
codegen_flags: <defaults>
</compile_context>

<pallas_src>
import functools

import jax
import jax.numpy as jnp
from jax.experimental import pallas as pl
from jax.experimental.pallas import tpu as pltpu

LANE = 128  # TPU lane width; all feature dims padded to this.


def _round_up(n: int, m: int) -> int:
    return ((n + m - 1) // m) * m


def _fused_mlp_kernel(x_ref, w_ref, o_ref, act_ref, *, num_layers, ones_col):
    """Whole MLP in one kernel invocation.

    x_ref:   (B, din)            true (unpadded) input
    w_ref:   (L, dpad, dpad)     stacked lane-padded weights, biases folded
                                 into row `ones_col`
    o_ref:   (B, dout)           true (unpadded) output
    act_ref: (B, dpad)           VMEM scratch for the padded activation
    """
    B, din = x_ref.shape
    dpad = act_ref.shape[1]
    dout = o_ref.shape[1]

    # Build the lane-padded activation in scratch:
    #   [:, :din]     = real input features
    #   [:, ones_col] = 1.0  (multiplies the folded bias row of every layer)
    #   elsewhere     = 0.0
    col = jax.lax.broadcasted_iota(jnp.int32, (B, dpad), 1)
    act_ref[...] = (col == ones_col).astype(jnp.float32)
    act_ref[:, :din] = x_ref[...]
    act = act_ref[...]

    # Hidden layers: (x @ W) already includes the bias; then ReLU.
    # fori_loop bounds each 128x128 weight's vreg live range to one iteration.
    def body(l, a):
        y = jnp.dot(a, w_ref[l], preferred_element_type=jnp.float32,
                    precision=jax.lax.Precision.HIGHEST)
        return jnp.maximum(y, 0.0)  # ReLU(1.0) = 1.0 keeps the ones-lane alive

    act = jax.lax.fori_loop(0, num_layers - 1, body, act)

    # Final layer: no ReLU; store only the true output lanes.
    y = jnp.dot(act, w_ref[num_layers - 1], preferred_element_type=jnp.float32,
                precision=jax.lax.Precision.HIGHEST)
    o_ref[...] = y[:, :dout].astype(o_ref.dtype)


def init_params(key, layers):
    """Mirrors nn.Linear init shapes (weights kept pre-transposed as (in, out))."""
    params = []
    for i, (din, dout) in enumerate(zip(layers, layers[1:])):
        kw, kb = jax.random.split(jax.random.fold_in(key, i))
        bound = 1.0 / float(din) ** 0.5
        w = jax.random.uniform(kw, (din, dout), jnp.float32, -bound, bound)
        b = jax.random.uniform(kb, (dout,), jnp.float32, -bound, bound)
        params.append((w, b))
    return params


def pack_params(params):
    """Stack all layers into one (L, dpad, dpad) array with biases folded.

    For layer l with real dims (din, dout):
      packed[l, :din, :dout]       = W_l
      packed[l, ones_col, :dout]   = b_l                 (bias fold)
      packed[l, ones_col, ones_col]= 1.0 (except last)   (keep ones-lane alive)
    `ones_col` is a padded lane (> every real feature dim), so it never leaks
    into real outputs and is dropped by the final slice.
    """
    num_layers = len(params)
    dmax = max(max(w.shape) for w, _ in params)
    dpad = _round_up(dmax + 1, LANE)  # reserve one padded lane for the ones column
    ones_col = dpad - 1
    assert ones_col >= dmax

    packed = jnp.zeros((num_layers, dpad, dpad), jnp.float32)
    for l, (w, b) in enumerate(params):
        din, dout = w.shape
        packed = packed.at[l, :din, :dout].set(w)
        packed = packed.at[l, ones_col, :dout].set(b)
        if l < num_layers - 1:
            packed = packed.at[l, ones_col, ones_col].set(1.0)
    return packed, ones_col


def net_forward(x, packed_w, ones_col, out_features):
    """Replicates Net.forward. x: [B, Din] f32 -> [B, out_features] f32."""
    B = x.shape[0]
    num_layers, dpad, _ = packed_w.shape

    vmem = pl.BlockSpec(memory_space=pltpu.MemorySpace.VMEM)
    kernel = functools.partial(_fused_mlp_kernel,
                               num_layers=num_layers, ones_col=ones_col)

    return pl.pallas_call(
        kernel,
        out_shape=jax.ShapeDtypeStruct((B, out_features), x.dtype),
        in_specs=[vmem, vmem],
        out_specs=vmem,
        scratch_shapes=[pltpu.VMEM((B, dpad), jnp.float32)],
    )(x, packed_w)


net_forward_jit = jax.jit(net_forward, static_argnums=(2, 3))


if __name__ == "__main__":
    # Small, module-consistent shapes: batch=8, Layers=[32, 64, 64, 16].
    Layers = [32, 64, 64, 16]
    batch = 8

    key = jax.random.PRNGKey(0)
    kx, kp = jax.random.split(key)
    x = jax.random.normal(kx, (batch, Layers[0]), jnp.float32)
    params = init_params(kp, Layers)
    packed_w, ones_col = pack_params(params)

    out = net_forward_jit(x, packed_w, ones_col, Layers[-1])
    out = jax.block_until_ready(out)

    # Pure-JAX reference (unpadded, unfused, f32).
    ref = x
    for l, (w, b) in enumerate(params):
        ref = jnp.dot(ref, w, precision=jax.lax.Precision.HIGHEST) + b
        if l < len(params) - 1:
            ref = jnp.maximum(ref, 0.0)

    assert out.shape == (batch, Layers[-1])
    max_err = float(jnp.max(jnp.abs(out - ref)))
    assert jnp.allclose(out, ref, atol=1e-3, rtol=1e-3), f"max_err={max_err}"

    print("KERNEL_OK")
</pallas_src>

<mosaic_0001>
module attributes {stable_mosaic.version = 11 : i64} {
  func.func @_fused_mlp_kernel(%arg0: memref<8x32xf32, #tpu.memory_space<vmem>>, %arg1: memref<3x128x128xf32, #tpu.memory_space<vmem>>, %arg2: memref<8x16xf32, #tpu.memory_space<vmem>>, %arg3: memref<8x128xf32, #tpu.memory_space<vmem>>) attributes {dimension_semantics = [], scalar_prefetch = 0 : i64, scratch_operands = 1 : i64, tpu.core_type = #tpu.core_type<tc>} {
    %0 = tpu.iota {dimensions = array<i32: 1>} : vector<8x128xi32>
    %c127_i32 = arith.constant 127 : i32
    %1 = vector.broadcast %c127_i32 : i32 to vector<8x128xi32>
    %2 = arith.cmpi eq, %0, %1 : vector<8x128xi32>
    %3 = arith.extui %2 : vector<8x128xi1> to vector<8x128xi32>
    %4 = arith.sitofp %3 : vector<8x128xi32> to vector<8x128xf32>
    %c0 = arith.constant 0 : index
    %c0_0 = arith.constant 0 : index
    %5 = vector.load %arg3[%c0, %c0_0] : memref<8x128xf32, #tpu.memory_space<vmem>>, vector<8x128xf32>
    tpu.vector_store %arg3[%c0, %c0_0], %4 {strides = array<i32>} : memref<8x128xf32, #tpu.memory_space<vmem>>, vector<8x128xf32>,
    %c0_1 = arith.constant 0 : index
    %c0_2 = arith.constant 0 : index
    %6 = vector.load %arg0[%c0_1, %c0_2] : memref<8x32xf32, #tpu.memory_space<vmem>>, vector<8x32xf32>
    %c0_3 = arith.constant 0 : index
    %c0_4 = arith.constant 0 : index
    %7 = vector.load %arg3[%c0_3, %c0_4] : memref<8x128xf32, #tpu.memory_space<vmem>>, vector<8x32xf32>
    tpu.vector_store %arg3[%c0_3, %c0_4], %6 {strides = array<i32>} : memref<8x128xf32, #tpu.memory_space<vmem>>, vector<8x32xf32>,
    %c0_5 = arith.constant 0 : index
    %c0_6 = arith.constant 0 : index
    %8 = vector.load %arg3[%c0_5, %c0_6] : memref<8x128xf32, #tpu.memory_space<vmem>>, vector<8x128xf32>
    %c0_i32 = arith.constant 0 : i32
    %c2_i32 = arith.constant 2 : i32
    %9 = arith.addi %c0_i32, %c2_i32 : i32
    %c1_i32 = arith.constant 1 : i32
    %10 = scf.for %arg4 = %c0_i32 to %9 step %c1_i32 iter_args(%arg5 = %8) -> (vector<8x128xf32>)  : i32 {
      %16 = arith.index_cast %arg4 : i32 to index
      %c0_12 = arith.constant 0 : index
      %c0_13 = arith.constant 0 : index
      %17 = vector.load %arg1[%16, %c0_12, %c0_13] : memref<3x128x128xf32, #tpu.memory_space<vmem>>, vector<1x128x128xf32>
      %18 = vector.shape_cast %17 : vector<1x128x128xf32> to vector<128x128xf32>
      %cst_14 = arith.constant dense<0.000000e+00> : vector<8x128xf32>
      %19 = tpu.matmul %arg5, %18, %cst_14 {dimension_numbers = #tpu.dot_dimension_numbers<[1], [0], [0], [1], [0, 0, 1, 1], [], []>, precision = #tpu.contract_precision<fp32>} : vector<8x128xf32>, vector<128x128xf32>, vector<8x128xf32> -> vector<8x128xf32>
      %cst_15 = arith.constant 0.000000e+00 : f32
      %20 = vector.broadcast %cst_15 : f32 to vector<8x128xf32>
      %21 = arith.maximumf %19, %20 : vector<8x128xf32>
      scf.yield %21 : vector<8x128xf32>
    }
    %c2_i32_7 = arith.constant 2 : i32
    %c2 = arith.constant 2 : index
    %c0_8 = arith.constant 0 : index
    %c0_9 = arith.constant 0 : index
    %11 = vector.load %arg1[%c2, %c0_8, %c0_9] : memref<3x128x128xf32, #tpu.memory_space<vmem>>, vector<1x128x128xf32>
    %12 = vector.shape_cast %11 : vector<1x128x128xf32> to vector<128x128xf32>
    %cst = arith.constant dense<0.000000e+00> : vector<8x128xf32>
    %13 = tpu.matmul %10, %12, %cst {dimension_numbers = #tpu.dot_dimension_numbers<[1], [0], [0], [1], [0, 0, 1, 1], [], []>, precision = #tpu.contract_precision<fp32>} : vector<8x128xf32>, vector<128x128xf32>, vector<8x128xf32> -> vector<8x128xf32>
    %14 = vector.extract_strided_slice %13 {offsets = [0, 0], sizes = [8, 16], strides = [1, 1]} : vector<8x128xf32> to vector<8x16xf32>
    %c0_10 = arith.constant 0 : index
    %c0_11 = arith.constant 0 : index
    %15 = vector.load %arg2[%c0_10, %c0_11] : memref<8x16xf32, #tpu.memory_space<vmem>>, vector<8x16xf32>
    tpu.vector_store %arg2[%c0_10, %c0_11], %14 {strides = array<i32>} : memref<8x16xf32, #tpu.memory_space<vmem>>, vector<8x16xf32>,
    return
  }
}

</mosaic_0001>

<bundles_post_ra>
// kernel: net_forward.1
= control target key start
LH: loop header
LB: loop body
LE: loop exit
PB: predicated region body
PF: predicated region fallthrough
CT: control target
= control target key end

     0   :  { %7 = vsyncpa [#allocation4], 0  ;;  %s1472_s0 = inlined_call_operand.hbm [shape: f32[8,32], index: 0, kind: input, shape index: {}]   ;;  %s1473_s1 = inlined_call_operand.hbm [shape: f32[3,128,128], index: 1, kind: input, shape index: {}]   ;;  %s1474_s2 = inlined_call_operand.hbm [shape: f32[8,16], index: 2, kind: output, shape index: {}]  }
   0x1   :  { %8 = vsyncpa [#allocation7], 0 }
   0x2   :  { %9 = vsyncpa [#allocation5], 0  ;;  %s15_s11 = sshll.u32 %s1472_s0, 4  ;;  %s925_s12 = smov [#allocation3]   ;;  %s16_s11 = int_to_ptr.hbm [resolvable:$true] %s15_s11 }
   0x3   :  { %s17_s13 = sshll.u32 %s925_s12, 4  ;;  %s25_s16 = sshll.u32 %s1473_s1, 4  ;;  %s18_s13 = int_to_ptr.vmem [resolvable:$true] %s17_s13  ;;  %s26_s16 = int_to_ptr.hbm [resolvable:$true] %s25_s16 }
   0x4   :  { %20 = dma.hbm_to_vmem [thread:$0]  %s16_s11, 128, %s18_s13, [#allocation4]  }
   0x5   :  { %s926_s17 = smov [#allocation6]   ;;  %s927_s19 = smov 128  }
   0x6   :  { %s27_s18 = sshll.u32 %s926_s17, 4  ;;  %s928_s20 = smov 8   ;;  %s28_s18 = int_to_ptr.vmem [resolvable:$true] %s27_s18 }
   0x7   :  { %33 = dma.hbm_to_vmem [thread:$0]  %s26_s16, 6144, %s28_s18, [#allocation7], %s927_s19, %s927_s19, %s928_s20  }
   0x8   :  { %911 = dma.done.wait [#allocation4], 128  }
   0x9   :  { %912 = vsyncadd [#allocation4], 4294967168 }
   0xa   :  { %913 = dma.done.wait [#allocation7], 6144  }
   0xb   :  { %914 = vsyncadd [#allocation7], 4294961152  ;;  %v42_v0 = vlaneseq  ;;  %v929_v2 = vmov 0.0   ;;  %vm49_vm1 = vcmask 261120   ;;  %v48_v4 = vld [vmem:[#allocation3] sm:$0xff]  ;;  %s954_s0 = smov 0  }
   0xd   :  { %v43_v1 = vand.u32 127, %v42_v0 }
   0xf   :  { %vm44_vm0 = vcmp.eq.s32.totalorder %v43_v1, 127 }
  0x10   :  { %v807_v3 = vsel %vm44_vm0, 1.0, %v929_v2 }
  0x11   :  { %47 = vst [vmem:[#allocation2] sm:$0xff] %v807_v3 }
  0x12   :  { %50 = vst.msk [vmem:[#allocation2] sm:$0xff] %vm49_vm1, %v48_v4 }
  0x19   :  { %v51_v5 = vld [vmem:[#allocation2] sm:$0xff]  }
  0x1a LB: > { %s808_s1 = sshll.u32 %s923_s0, 7  ;;  %s57_s0 = sadd.s32 1, %s923_s0   ;;  %s923_s0 = sphi %s954_s0, %s57_s0   ;;  %v919_v5 = vphi %v51_v5, %v1476_v5  }
  0x1b   : > { %s963_s21 = scalar_lea.vmem [#allocation6], %s808_s1  ;;  %p54_p0 = scmp.ge.s32.totalorder %s57_s0, 2  }
  0x1c   : > { %v76_v6 = vld [vmem:[%s963_s21 + $0x78] sm:$0xff]  ;;  %v75_v7 = vld [vmem:[%s963_s21 + $0x70] sm:$0xff]  ;;  %v74_v8 = vld [vmem:[%s963_s21 + $0x68] sm:$0xff]  ;;  %s930_s22 = smov (%p54_p0), [#allocation8]   ;;  %s786_s26 = sshll.u32 (%p54_p0), %s1474_s2, 4  ;;  %vm777_vm2 = vcmask (%p54_p0), 130048   ;;  %s787_s26 = int_to_ptr.hbm [resolvable:$true] %s786_s26 }
  0x1d   : > { %v968_v9 = vand.u32 4294901760, %v76_v6  ;;  %v970_v10 = vand.u32 4294901760, %v75_v7  ;;  %v972_v11 = vand.u32 4294901760, %v74_v8  ;;  %v73_v12 = vld [vmem:[%s963_s21 + $0x60] sm:$0xff]  ;;  %v72_v13 = vld [vmem:[%s963_s21 + $0x58] sm:$0xff]  ;;  %v71_v14 = vld [vmem:[%s963_s21 + $0x50] sm:$0xff] }
  0x1e   : > { %v977_v15 = vand.u32 4294901760, %v73_v12  ;;  %v979_v16 = vand.u32 4294901760, %v72_v13  ;;  %v981_v17 = vand.u32 4294901760, %v71_v14  ;;  %v70_v18 = vld [vmem:[%s963_s21 + $0x48] sm:$0xff]  ;;  %v69_v19 = vld [vmem:[%s963_s21 + $0x40] sm:$0xff]  ;;  %v68_v24 = vld [vmem:[%s963_s21 + $0x38] sm:$0xff] }
  0x1f   : > { %78 = vmatpush.msra.mxu0 %v968_v9  ;;  %v987_v20 = vsub.f32 %v76_v6, %v968_v9  ;;  %v990_v21 = vsub.f32 %v75_v7, %v970_v10  ;;  %v993_v22 = vsub.f32 %v74_v8, %v972_v11  ;;  %v995_v23 = vand.u32 4294901760, %v70_v18  ;;  %274 = vmatpush.msra.mxu3 %v968_v9  ;;  %v67_v32 = vld [vmem:[%s963_s21 + $0x30] sm:$0xff]  ;;  %v66_v42 = vld [vmem:[%s963_s21 + $0x28] sm:$0xff]  ;;  %v65_v48 = vld [vmem:[%s963_s21 + $0x20] sm:$0xff]  ;;  %s784_s23 = sshll.u32 (%p54_p0), %s930_s22, 4  ;;  %s785_s23 = int_to_ptr.vmem [resolvable:$true] %s784_s23 }
  0x20   : > { %v1000_v25 = vsub.f32 %v73_v12, %v977_v15  ;;  %v1003_v26 = vsub.f32 %v72_v13, %v979_v16  ;;  %v1006_v27 = vsub.f32 %v71_v14, %v981_v17  ;;  %v1012_v31 = vand.u32 4294901760, %v69_v19  ;;  %v64_v53 = vld [vmem:[%s963_s21 + $0x18] sm:$0xff]  ;;  %v63_v61 = vld [vmem:[%s963_s21 + $0x10] sm:$0xff]  ;;  %v62_v2 = vld [vmem:[%s963_s21 + $0x8] sm:$0xff] }
  0x21   : > { %80 = vmatpush.msra.mxu0 %v970_v10  ;;  %v120_v28 = vand.u32 4294901760, %v987_v20  ;;  %v126_v29 = vand.u32 4294901760, %v990_v21  ;;  %v132_v30 = vand.u32 4294901760, %v993_v22  ;;  %221 = vmatpush.msra.mxu2 %v987_v20  ;;  %v1017_v34 = vand.u32 4294901760, %v68_v24  ;;  %v61_v8 = vld [vmem:[%s963_s21] sm:$0xff] }
  0x22   : > { %v138_v33 = vand.u32 4294901760, %v1000_v25  ;;  %v1020_v35 = vsub.f32 %v70_v18, %v995_v23  ;;  %276 = vmatpush.msra.mxu3 %v970_v10  ;;  %v144_v39 = vand.u32 4294901760, %v1003_v26  ;;  %v150_v40 = vand.u32 4294901760, %v1006_v27 }
  0x23   : > { %82 = vmatpush.msra.mxu0 %v972_v11  ;;  %v121_v36 = vsub.f32 %v987_v20, %v120_v28  ;;  %v127_v37 = vsub.f32 %v990_v21, %v126_v29  ;;  %v133_v38 = vsub.f32 %v993_v22, %v132_v30  ;;  %224 = vmatpush.msra.mxu2 %v990_v21  ;;  %v1036_v41 = vand.u32 4294901760, %v67_v32 }
  0x24   : > { %278 = vmatpush.msra.mxu3 %v972_v11  ;;  %v139_v45 = vsub.f32 %v1000_v25, %v138_v33  ;;  %v1045_v46 = vsub.f32 %v69_v19, %v1012_v31  ;;  %v156_v47 = vand.u32 4294901760, %v1020_v35  ;;  %v145_v50 = vsub.f32 %v1003_v26, %v144_v39 }
  0x25   : > { %v122_v43 = vand.u32 4294901760, %v121_v36  ;;  %84 = vmatpush.msra.mxu0 %v977_v15  ;;  %v128_v44 = vand.u32 4294901760, %v127_v37  ;;  %227 = vmatpush.msra.mxu2 %v993_v22  ;;  %v134_v49 = vand.u32 4294901760, %v133_v38  ;;  %v1055_v51 = vand.u32 4294901760, %v66_v42 }
  0x26   : > { %280 = vmatpush.msra.mxu3 %v977_v15  ;;  %v1058_v52 = vsub.f32 %v68_v24, %v1017_v34  ;;  %v162_v54 = vand.u32 4294901760, %v1045_v46  ;;  %v140_v55 = vand.u32 4294901760, %v139_v45  ;;  %v151_v56 = vsub.f32 %v1006_v27, %v150_v40 }
  0x27   : > { %123 = vmatpush.msra.mxu1 %v122_v43  ;;  %86 = vmatpush.msra.mxu0 %v979_v16  ;;  %v1068_v57 = vand.u32 4294901760, %v65_v48  ;;  %v1071_v58 = vsub.f32 %v67_v32, %v1036_v41  ;;  %v157_v59 = vsub.f32 %v1020_v35, %v156_v47  ;;  %v1076_v60 = vand.u32 4294901760, %v64_v53 }
  0x28   : > { %230 = vmatpush.msra.mxu2 %v1000_v25  ;;  %282 = vmatpush.msra.mxu3 %v979_v16  ;;  %v146_v62 = vand.u32 4294901760, %v145_v50  ;;  %v168_v63 = vand.u32 4294901760, %v1058_v52  ;;  %v1084_v0 = vsub.f32 %v66_v42, %v1055_v51  ;;  %v163_v1 = vsub.f32 %v1045_v46, %v162_v54 }
  0x29   : > { %129 = vmatpush.msra.mxu1 %v128_v44  ;;  %88 = vmatpush.msra.mxu0 %v981_v17  ;;  %v152_v3 = vand.u32 4294901760, %v151_v56  ;;  %v174_v4 = vand.u32 4294901760, %v1071_v58  ;;  %v1094_v6 = vand.u32 4294901760, %v63_v61  ;;  %v1097_v7 = vsub.f32 %v65_v48, %v1068_v57 }
  0x2a   : > { %233 = vmatpush.msra.mxu2 %v1003_v26  ;;  %284 = vmatpush.msra.mxu3 %v981_v17  ;;  %v158_v12 = vand.u32 4294901760, %v157_v59  ;;  %v1101_v13 = vsub.f32 %v64_v53, %v1076_v60  ;;  %v169_v14 = vsub.f32 %v1058_v52, %v168_v63  ;;  %v180_v18 = vand.u32 4294901760, %v1084_v0 }
  0x2b   : > { %135 = vmatpush.msra.mxu1 %v134_v49  ;;  %90 = vmatpush.msra.mxu0 %v995_v23  ;;  %v1110_v19 = vand.u32 4294901760, %v62_v2  ;;  %v164_v24 = vand.u32 4294901760, %v163_v1  ;;  %v1112_v32 = vand.u32 4294901760, %v61_v8  ;;  %v175_v36 = vsub.f32 %v1071_v58, %v174_v4 }
  0x2c   : > { %236 = vmatpush.msra.mxu2 %v1006_v27  ;;  %286 = vmatpush.msra.mxu3 %v995_v23  ;;  %v186_v37 = vand.u32 4294901760, %v1097_v7  ;;  %v1122_v38 = vsub.f32 %v63_v61, %v1094_v6  ;;  %v1125_v42 = vand.u32 4294901760, %v919_v5  ;;  %v192_v43 = vand.u32 4294901760, %v1101_v13  ;;  %v435_v27 = vld [vmem:[#allocation6 + $0x178] sm:$0xff] (%p54_p0) }
  0x2d   : > { %141 = vmatpush.msra.mxu1 %v140_v55  ;;  %92 = vmatpush.msra.mxu0 %v1012_v31  ;;  %v170_v44 = vand.u32 4294901760, %v169_v14  ;;  %v181_v45 = vsub.f32 %v1084_v0, %v180_v18  ;;  %v1135_v48 = vsub.f32 %v62_v2, %v1110_v19  ;;  %v176_v50 = vand.u32 4294901760, %v175_v36 }
  0x2e   : > { %239 = vmatpush.msra.mxu2 %v1020_v35  ;;  %288 = vmatpush.msra.mxu3 %v1012_v31  ;;  %v110_v49 = vsub.f32 %v919_v5, %v1125_v42  ;;  %v187_v53 = vsub.f32 %v1097_v7, %v186_v37  ;;  %v198_v55 = vand.u32 4294901760, %v1122_v38  ;;  %v1147_v56 = vsub.f32 %v61_v8, %v1112_v32  ;;  %v431_v35 = vld [vmem:[#allocation6 + $0x158] sm:$0xff] (%p54_p0) }
  0x2f   : > { %147 = vmatpush.msra.mxu1 %v146_v62  ;;  %94 = vmatpush.msra.mxu0 %v1017_v34  ;;  %v182_v5 = vand.u32 4294901760, %v181_v45  ;;  %v193_v59 = vsub.f32 %v1101_v13, %v192_v43  ;;  %v204_v61 = vand.u32 4294901760, %v1135_v48 }
  0x30   : > { %242 = vmatpush.msra.mxu2 %v1045_v46  ;;  %290 = vmatpush.msra.mxu3 %v1017_v34  ;;  %v111_v62 = vand.u32 4294901760, %v110_v49  ;;  %v188_v1 = vand.u32 4294901760, %v187_v53  ;;  %v199_v2 = vsub.f32 %v1122_v38, %v198_v55 }
  0x31   : > { %153 = vmatpush.msra.mxu1 %v152_v3  ;;  %96 = vmatpush.msra.mxu0 %v1036_v41  ;;  %v210_v3 = vand.u32 4294901760, %v1147_v56  ;;  %v194_v8 = vand.u32 4294901760, %v193_v59 }
  0x32   : > { %245 = vmatpush.msra.mxu2 %v1058_v52  ;;  %292 = vmatpush.msra.mxu3 %v1036_v41  ;;  %v112_v14 = vsub.f32 %v110_v49, %v111_v62 }
  0x33   : > { %159 = vmatpush.msra.mxu1 %v158_v12  ;;  %98 = vmatpush.msra.mxu0 %v1055_v51  ;;  %v205_v12 = vsub.f32 %v1135_v48, %v204_v61  ;;  %v211_v36 = vsub.f32 %v1147_v56, %v210_v3 }
  0x34   : > { %248 = vmatpush.msra.mxu2 %v1071_v58  ;;  %294 = vmatpush.msra.mxu3 %v1055_v51  ;;  %v113_v45 = vand.u32 4294901760, %v112_v14 }
  0x35   : > { %165 = vmatpush.msra.mxu1 %v164_v24  ;;  %100 = vmatpush.msra.mxu0 %v1068_v57  ;;  %v200_v24 = vand.u32 4294901760, %v199_v2  ;;  %v424_v2 = vld [vmem:[#allocation6 + $0x120] sm:$0xff] (%p54_p0) }
  0x36   : > { %251 = vmatpush.msra.mxu2 %v1084_v0  ;;  %296 = vmatpush.msra.mxu3 %v1068_v57 }
  0x37   : > { %171 = vmatpush.msra.mxu1 %v170_v44  ;;  %102 = vmatpush.msra.mxu0 %v1076_v60  ;;  %v206_v44 = vand.u32 4294901760, %v205_v12 }
  0x38   : > { %254 = vmatpush.msra.mxu2 %v1097_v7  ;;  %298 = vmatpush.msra.mxu3 %v1076_v60 }
  0x39   : > { %177 = vmatpush.msra.mxu1 %v176_v50  ;;  %104 = vmatpush.msra.mxu0 %v1094_v6  ;;  %v212_v50 = vand.u32 4294901760, %v211_v36 }
  0x3a   : > { %257 = vmatpush.msra.mxu2 %v1101_v13  ;;  %300 = vmatpush.msra.mxu3 %v1094_v6 }
  0x3b   : > { %183 = vmatpush.msra.mxu1 %v182_v5  ;;  %106 = vmatpush.msra.mxu0 %v1110_v19 }
  0x3c   : > { %260 = vmatpush.msra.mxu2 %v1122_v38  ;;  %302 = vmatpush.msra.mxu3 %v1110_v19 }
  0x3d   : > { %189 = vmatpush.msra.mxu1 %v188_v1  ;;  %108 = vmatpush.msra.mxu0 %v1112_v32 }
  0x3e   : > { %263 = vmatpush.msra.mxu2 %v1135_v48  ;;  %304 = vmatpush.msra.mxu3 %v1112_v32 }
  0x3f   : > { %315 = vmatpush.msrb.mxu0 %v120_v28  ;;  %195 = vmatpush.msra.mxu1 %v194_v8  ;;  %v434_v28 = vld [vmem:[#allocation6 + $0x170] sm:$0xff] (%p54_p0) }
  0x40   : > { %266 = vmatpush.msra.mxu2 %v1147_v56  ;;  %308 = vmatmul.f32.vlgmr.msra.gmra.mxu3 %v111_v62  ;;  %v425_v56 = vld [vmem:[#allocation6 + $0x128] sm:$0xff] (%p54_p0) }
  0x41   : > { %319 = vmatpush.msrb.mxu0 %v126_v29  ;;  %201 = vmatpush.msra.mxu1 %v200_v24  ;;  %v433_v29 = vld [vmem:[#allocation6 + $0x168] sm:$0xff] (%p54_p0)  ;;  %v1307_v12 = vand.u32 (%p54_p0), 4294901760, %v425_v56  ;;  %v423_v24 = vld [vmem:[#allocation6 + $0x118] sm:$0xff] (%p54_p0) }
  0x42   : > { %269 = vmatmul.f32.vlgmr.msra.gmra.mxu2 %v110_v49  ;;  %114 = vmatmul.f32.vlgmr.msra.gmra.mxu0 %v113_v45 }
  0x43   : > { %323 = vmatpush.msrb.mxu0 %v132_v30  ;;  %207 = vmatpush.msra.mxu1 %v206_v44  ;;  %v1229_v30 = vand.u32 (%p54_p0), 4294901760, %v435_v27 }
  0x45   : > { %327 = vmatpush.msrb.mxu0 %v138_v33  ;;  %213 = vmatpush.msra.mxu1 %v212_v50  ;;  %v1233_v33 = vand.u32 (%p54_p0), 4294901760, %v433_v29  ;;  %v1243_v52 = vsub.f32 (%p54_p0), %v435_v27, %v1229_v30  ;;  %v1319_v50 = vand.u32 (%p54_p0), 4294901760, %v424_v2 }
  0x46   : > { %215 = vmatmul.f32.vlgmr.msra.gmra.mxu1 %v1125_v42  ;;  %633 = vmatpush.msra.mxu3 (%p54_p0), %v1229_v30 }
  0x47   : > { %382 = vmatpush.msrb.mxu1 %v968_v9  ;;  %331 = vmatpush.msrb.mxu0 %v144_v39  ;;  %v430_v39 = vld [vmem:[#allocation6 + $0x150] sm:$0xff] (%p54_p0) }
  0x48   :  { %v1239_v46 = vand.u32 (%p54_p0), 4294901760, %v430_v39  ;;  %580 = vmatpush.msra.mxu2 (%p54_p0), %v1243_v52 }
  0x49   : > { %384 = vmatpush.msrb.mxu1 %v970_v10  ;;  %335 = vmatpush.msrb.mxu0 %v150_v40 }
  0x4b   : > { %386 = vmatpush.msrb.mxu1 %v972_v11  ;;  %339 = vmatpush.msrb.mxu0 %v156_v47  ;;  %v429_v47 = vld [vmem:[#allocation6 + $0x148] sm:$0xff] (%p54_p0) }
  0x4c   :  { %v1251_v58 = vand.u32 (%p54_p0), 4294901760, %v429_v47 }
  0x4d   : > { %388 = vmatpush.msrb.mxu1 %v977_v15  ;;  %343 = vmatpush.msrb.mxu0 %v162_v54 }
  0x4e   :  { %v1274_v38 = vsub.f32 (%p54_p0), %v429_v47, %v1251_v58 }
  0x4f   : > { %390 = vmatpush.msrb.mxu1 %v979_v16  ;;  %347 = vmatpush.msrb.mxu0 %v168_v63 }
  0x50   :  { %v515_v1 = vand.u32 (%p54_p0), 4294901760, %v1274_v38 }
  0x51   : > { %392 = vmatpush.msrb.mxu1 %v981_v17  ;;  %351 = vmatpush.msrb.mxu0 %v174_v4  ;;  %v1261_v4 = vsub.f32 (%p54_p0), %v430_v39, %v1239_v46 }
  0x53   : > { %394 = vmatpush.msrb.mxu1 %v995_v23  ;;  %355 = vmatpush.msrb.mxu0 %v180_v18  ;;  %v509_v53 = vand.u32 (%p54_p0), 4294901760, %v1261_v4 }
  0x55   : > { %396 = vmatpush.msrb.mxu1 %v1012_v31  ;;  %359 = vmatpush.msrb.mxu0 %v186_v37  ;;  %v1231_v31 = vand.u32 (%p54_p0), 4294901760, %v434_v28  ;;  %v510_v36 = vsub.f32 (%p54_p0), %v1261_v4, %v509_v53 }
  0x57   : > { %398 = vmatpush.msrb.mxu1 %v1017_v34  ;;  %363 = vmatpush.msrb.mxu0 %v192_v43  ;;  %v432_v34 = vld [vmem:[#allocation6 + $0x160] sm:$0xff] (%p54_p0)  ;;  %v1246_v54 = vsub.f32 (%p54_p0), %v434_v28, %v1231_v31  ;;  %v1346_v28 = vsub.f32 (%p54_p0), %v424_v2, %v1319_v50 }
  0x58   :  { %v1235_v40 = vand.u32 (%p54_p0), 4294901760, %v432_v34  ;;  %635 = vmatpush.msra.mxu3 (%p54_p0), %v1231_v31 }
  0x59   : > { %400 = vmatpush.msrb.mxu1 %v1036_v41  ;;  %367 = vmatpush.msrb.mxu0 %v198_v55  ;;  %v1237_v41 = vand.u32 (%p54_p0), 4294901760, %v431_v35  ;;  %v485_v7 = vand.u32 (%p54_p0), 4294901760, %v1246_v54 }
  0x5a   :  { %v1255_v63 = vsub.f32 (%p54_p0), %v432_v34, %v1235_v40  ;;  %583 = vmatpush.msra.mxu2 (%p54_p0), %v1246_v54  ;;  %637 = vmatpush.msra.mxu3 (%p54_p0), %v1233_v33 }
  0x5b   : > { %402 = vmatpush.msrb.mxu1 %v1055_v51  ;;  %371 = vmatpush.msrb.mxu0 %v204_v61  ;;  %v428_v51 = vld [vmem:[#allocation6 + $0x140] sm:$0xff] (%p54_p0)  ;;  %v1258_v0 = vsub.f32 (%p54_p0), %v431_v35, %v1237_v41  ;;  %v486_v43 = vsub.f32 (%p54_p0), %v1246_v54, %v485_v7 }
  0x5c   :  { %v1267_v18 = vand.u32 (%p54_p0), 4294901760, %v428_v51  ;;  %639 = vmatpush.msra.mxu3 (%p54_p0), %v1235_v40 }
  0x5d   : > { %404 = vmatpush.msrb.mxu1 %v1068_v57  ;;  %375 = vmatpush.msrb.mxu0 %v210_v3  ;;  %v1249_v57 = vsub.f32 (%p54_p0), %v433_v29, %v1233_v33  ;;  %v503_v49 = vand.u32 (%p54_p0), 4294901760, %v1258_v0  ;;  %v487_v59 = vand.u32 (%p54_p0), 4294901760, %v486_v43  ;;  %v420_v29 = vld [vmem:[#allocation6 + $0x100] sm:$0xff] (%p54_p0) }
  0x5e   : > { %377 = vmatmul.f32.vlgmr.msrb.gmra.mxu0 %v1125_v42  ;;  %v1298_v62 = vsub.f32 (%p54_p0), %v428_v51, %v1267_v18  ;;  %641 = vmatpush.msra.mxu3 (%p54_p0), %v1237_v41 }
  0x5f   : > { %406 = vmatpush.msrb.mxu1 %v1076_v60  ;;  %437 = vmatpush.msra.mxu0 (%p54_p0), %v1229_v30  ;;  %v427_v60 = vld [vmem:[#allocation6 + $0x138] sm:$0xff] (%p54_p0)  ;;  %v491_v13 = vand.u32 (%p54_p0), 4294901760, %v1249_v57  ;;  %v504_v8 = vsub.f32 (%p54_p0), %v1258_v0, %v503_v49 }
  0x60   :  { %v1271_v37 = vand.u32 (%p54_p0), 4294901760, %v427_v60  ;;  %586 = vmatpush.msra.mxu2 (%p54_p0), %v1249_v57  ;;  %v521_v45 = vand.u32 (%p54_p0), 4294901760, %v1298_v62  ;;  %643 = vmatpush.msra.mxu3 (%p54_p0), %v1239_v46 }
  0x61   : > { %408 = vmatpush.msrb.mxu1 %v1094_v6  ;;  %439 = vmatpush.msra.mxu0 (%p54_p0), %v1231_v31  ;;  %v479_v6 = vand.u32 (%p54_p0), 4294901760, %v1243_v52  ;;  %v492_v48 = vsub.f32 (%p54_p0), %v1249_v57, %v491_v13 }
  0x62   :  { %v1310_v14 = vsub.f32 (%p54_p0), %v427_v60, %v1271_v37  ;;  %589 = vmatpush.msra.mxu2 (%p54_p0), %v1255_v63  ;;  %645 = vmatpush.msra.mxu3 (%p54_p0), %v1251_v58 }
  0x63   : > { %410 = vmatpush.msrb.mxu1 %v1110_v19  ;;  %v426_v19 = vld [vmem:[#allocation6 + $0x130] sm:$0xff] (%p54_p0)  ;;  %441 = vmatpush.msra.mxu0 (%p54_p0), %v1233_v33  ;;  %v493_v3 = vand.u32 (%p54_p0), 4294901760, %v492_v48  ;;  %v545_v48 = vand.u32 (%p54_p0), 4294901760, %v1346_v28 }
  0x64   :  { %v1290_v55 = vand.u32 (%p54_p0), 4294901760, %v426_v19  ;;  %592 = vmatpush.msra.mxu2 (%p54_p0), %v1258_v0  ;;  %647 = vmatpush.msra.mxu3 (%p54_p0), %v1267_v18 }
  0x65   : > { %412 = vmatpush.msrb.mxu1 %v1112_v32  ;;  %v497_v32 = vand.u32 (%p54_p0), 4294901760, %v1255_v63  ;;  %443 = vmatpush.msra.mxu0 (%p54_p0), %v1235_v40 }
  0x66   : > { %414 = vmatmul.f32.vlgmr.msrb.gmra.mxu1 %v1125_v42  ;;  %v480_v42 = vsub.f32 (%p54_p0), %v1243_v52, %v479_v6  ;;  %595 = vmatpush.msra.mxu2 (%p54_p0), %v1261_v4 }
  0x67   :  { %v498_v61 = vsub.f32 (%p54_p0), %v1255_v63, %v497_v32  ;;  %445 = vmatpush.msra.mxu0 (%p54_p0), %v1237_v41  ;;  %649 = vmatpush.msra.mxu3 (%p54_p0), %v1271_v37 }
  0x68   :  { %598 = vmatpush.msra.mxu2 (%p54_p0), %v1274_v38 }
  0x69   :  { %447 = vmatpush.msra.mxu0 (%p54_p0), %v1239_v46  ;;  %v499_v44 = vand.u32 (%p54_p0), 4294901760, %v498_v61  ;;  %651 = vmatpush.msra.mxu3 (%p54_p0), %v1290_v55 }
  0x6a   :  { %601 = vmatpush.msra.mxu2 (%p54_p0), %v1298_v62 }
  0x6b   :  { %449 = vmatpush.msra.mxu0 (%p54_p0), %v1251_v58  ;;  %653 = vmatpush.msra.mxu3 (%p54_p0), %v1307_v12 }
  0x6c   :  { %604 = vmatpush.msra.mxu2 (%p54_p0), %v1310_v14 }
  0x6d   :  { %451 = vmatpush.msra.mxu0 (%p54_p0), %v1267_v18  ;;  %655 = vmatpush.msra.mxu3 (%p54_p0), %v1319_v50 }
  0x6f   :  { %453 = vmatpush.msra.mxu0 (%p54_p0), %v1271_v37 }
  0x71   :  { %455 = vmatpush.msra.mxu0 (%p54_p0), %v1290_v55 }
  0x73   :  { %457 = vmatpush.msra.mxu0 (%p54_p0), %v1307_v12 }
  0x75   :  { %459 = vmatpush.msra.mxu0 (%p54_p0), %v1319_v50 }
  0xbf   : > { %v115_v10 = vpop.f32.mrf.mxu0 }
  0xc3   : > { %v216_v9 = vpop.f32.mrf.mxu1  ;;  %v309_v17 = vpop.f32.mrf.mxu3 }
  0xc4   : > { %v217_v11 = vadd.f32 %v216_v9, %v115_v10  ;;  %v1322_v9 = vsub.f32 (%p54_p0), %v426_v19, %v1290_v55  ;;  %v516_v10 = vsub.f32 (%p54_p0), %v1274_v38, %v515_v1  ;;  %v1363_v19 = vand.u32 (%p54_p0), 4294901760, %v420_v29 }
  0xc5   : > { %v270_v15 = vpop.f32.mrf.mxu2 }
  0xc6   : > { %v271_v16 = vadd.f32 %v270_v15, %v217_v11  ;;  %v1327_v11 = vand.u32 (%p54_p0), 4294901760, %v423_v24  ;;  %v422_v15 = vld [vmem:[#allocation6 + $0x110] sm:$0xff] (%p54_p0)  ;;  %v517_v34 = vand.u32 (%p54_p0), 4294901760, %v516_v10  ;;  %607 = vmatpush.msra.mxu2 (%p54_p0), %v1322_v9 }
  0xc7   :  { %v1343_v27 = vand.u32 (%p54_p0), 4294901760, %v422_v15 }
  0xc8   : > { %v310_v20 = vadd.f32 %v309_v17, %v271_v16  ;;  %v505_v16 = vand.u32 (%p54_p0), 4294901760, %v504_v8  ;;  %v527_v17 = vand.u32 (%p54_p0), 4294901760, %v1310_v14  ;;  %v1349_v35 = vsub.f32 (%p54_p0), %v423_v24, %v1327_v11  ;;  %461 = vmatpush.msra.mxu0 (%p54_p0), %v1327_v11  ;;  %657 = vmatpush.msra.mxu3 (%p54_p0), %v1327_v11 }
  0xc9   :  { %v546_v24 = vsub.f32 (%p54_p0), %v1346_v28, %v545_v48 }
  0xca   :  { %v528_v39 = vsub.f32 (%p54_p0), %v1310_v14, %v527_v17  ;;  %463 = vmatpush.msra.mxu0 (%p54_p0), %v1343_v27  ;;  %659 = vmatpush.msra.mxu3 (%p54_p0), %v1343_v27 }
  0xdb   : > { %v378_v21 = vpop.f32.mrf.mxu0 }
  0xdc   : > { %v379_v22 = vadd.f32 %v378_v21, %v310_v20  ;;  %v1334_v20 = vsub.f32 (%p54_p0), %v425_v56, %v1307_v12  ;;  %v511_v21 = vand.u32 (%p54_p0), 4294901760, %v510_v36  ;;  %v1373_v56 = vsub.f32 (%p54_p0), %v422_v15, %v1343_v27 }
  0xde   :  { %v539_v47 = vand.u32 (%p54_p0), 4294901760, %v1334_v20  ;;  %v557_v36 = vand.u32 (%p54_p0), 4294901760, %v1373_v56  ;;  %610 = vmatpush.msra.mxu2 (%p54_p0), %v1334_v20 }
  0xe0   :  { %v540_v61 = vsub.f32 (%p54_p0), %v1334_v20, %v539_v47  ;;  %613 = vmatpush.msra.mxu2 (%p54_p0), %v1346_v28 }
  0xe2   :  { %616 = vmatpush.msra.mxu2 (%p54_p0), %v1349_v35 }
  0xe3   : > { %v415_v23 = vpop.f32.mrf.mxu1 }
  0xe4   : > { %v416_v25 = vadd.f32 %v415_v23, %v379_v22  ;;  %v421_v22 = vld [vmem:[#allocation6 + $0x108] sm:$0xff] (%p54_p0)  ;;  %v522_v23 = vsub.f32 (%p54_p0), %v1298_v62, %v521_v45  ;;  %619 = vmatpush.msra.mxu2 (%p54_p0), %v1373_v56 }
  0xe5   :  { %56 = sbr.rel (!%p54_p0) target bundleno = 26 (0x1a), region = 45  ;;  %v1358_v51 = vand.u32 (%p54_p0), 4294901760, %v421_v22 }
  0xe6   : > { %v1221_v5 = vmax.f32 %v416_v25, 0.0   ;;  %v533_v25 = vand.u32 (%p54_p0), 4294901760, %v1322_v9 }
  0xe7   :  { %v1383_v2 = vsub.f32 (%p54_p0), %v421_v22, %v1358_v51  ;;  %v558_v22 = vsub.f32 (%p54_p0), %v1373_v56, %v557_v36  ;;  %465 = vmatpush.msra.mxu0 (%p54_p0), %v1358_v51  ;;  %661 = vmatpush.msra.mxu3 (%p54_p0), %v1358_v51 }
  0xe8   : > { %v1475_v26 = vmov %v1221_v5  ;;  %v534_v43 = vsub.f32 (%p54_p0), %v1322_v9, %v533_v25 }
  0xe9   : > { %v1476_v5 = vmov %v1475_v26  ;;  %v1361_v60 = vand.u32 (%p54_p0), 4294901760, %v1475_v26  ;;  %v563_v15 = vand.u32 (%p54_p0), 4294901760, %v1383_v2  ;;  %467 = vmatpush.msra.mxu0 (%p54_p0), %v1363_v19  ;;  %622 = vmatpush.msra.mxu2 (%p54_p0), %v1383_v2 }
  0xea   :  { %v481_v5 = vand.u32 4294901760, %v480_v42  ;;  %v523_v42 = vand.u32 4294901760, %v522_v23  ;;  %v535_v8 = vand.u32 4294901760, %v534_v43  ;;  %663 = vmatpush.msra.mxu3 %v1363_v19 }
  0xeb   :  { %674 = vmatpush.msrb.mxu0 %v479_v6 }
  0xec   :  { %482 = vmatpush.msra.mxu1 %v481_v5  ;;  %v551_v5 = vand.u32 4294901760, %v1349_v35 }
  0xed   :  { %678 = vmatpush.msrb.mxu0 %v485_v7 }
  0xee   :  { %488 = vmatpush.msra.mxu1 %v487_v59  ;;  %v529_v59 = vand.u32 4294901760, %v528_v39  ;;  %v552_v10 = vsub.f32 %v1349_v35, %v551_v5 }
  0xef   :  { %682 = vmatpush.msrb.mxu0 %v491_v13 }
  0xf0   :  { %494 = vmatpush.msra.mxu1 %v493_v3  ;;  %v469_v3 = vsub.f32 %v1475_v26, %v1361_v60  ;;  %v541_v26 = vand.u32 4294901760, %v540_v61 }
  0xf1   :  { %686 = vmatpush.msrb.mxu0 %v497_v32 }
  0xf2   :  { %500 = vmatpush.msra.mxu1 %v499_v44  ;;  %v1395_v44 = vsub.f32 %v420_v29, %v1363_v19  ;;  %v553_v29 = vand.u32 4294901760, %v552_v10 }
  0xf3   :  { %690 = vmatpush.msrb.mxu0 %v503_v49 }
  0xf4   :  { %506 = vmatpush.msra.mxu1 %v505_v16  ;;  %v470_v16 = vand.u32 4294901760, %v469_v3  ;;  %v569_v23 = vand.u32 4294901760, %v1395_v44  ;;  %625 = vmatpush.msra.mxu2 %v1395_v44 }
  0xf5   :  { %628 = vmatmul.f32.vlgmr.msra.gmra.mxu2 %v469_v3  ;;  %694 = vmatpush.msrb.mxu0 %v509_v53 }
  0xf6   :  { %512 = vmatpush.msra.mxu1 %v511_v21  ;;  %v547_v21 = vand.u32 4294901760, %v546_v24  ;;  %v471_v39 = vsub.f32 %v469_v3, %v470_v16  ;;  %v570_v43 = vsub.f32 %v1395_v44, %v569_v23  ;;  %667 = vmatmul.f32.vlgmr.msra.gmra.mxu3 %v470_v16 }
  0xf7   :  { %698 = vmatpush.msrb.mxu0 %v515_v1 }
  0xf8   :  { %518 = vmatpush.msra.mxu1 %v517_v34  ;;  %v564_v34 = vsub.f32 %v1383_v2, %v563_v15  ;;  %v472_v61 = vand.u32 4294901760, %v471_v39 }
  0xf9   :  { %702 = vmatpush.msrb.mxu0 %v521_v45 }
  0xfa   :  { %524 = vmatpush.msra.mxu1 %v523_v42  ;;  %v559_v42 = vand.u32 4294901760, %v558_v22  ;;  %473 = vmatmul.f32.vlgmr.msra.gmra.mxu0 %v472_v61 }
  0xfb   :  { %706 = vmatpush.msrb.mxu0 %v527_v17 }
  0xfc   :  { %530 = vmatpush.msra.mxu1 %v529_v59  ;;  %v565_v59 = vand.u32 4294901760, %v564_v34 }
  0xfd   :  { %710 = vmatpush.msrb.mxu0 %v533_v25 }
  0xfe   :  { %536 = vmatpush.msra.mxu1 %v535_v8  ;;  %v571_v8 = vand.u32 4294901760, %v570_v43 }
  0xff   :  { %714 = vmatpush.msrb.mxu0 %v539_v47 }
 0x100   :  { %542 = vmatpush.msra.mxu1 %v541_v26 }
 0x101   :  { %718 = vmatpush.msrb.mxu0 %v545_v48 }
 0x102   :  { %548 = vmatpush.msra.mxu1 %v547_v21 }
 0x103   :  { %722 = vmatpush.msrb.mxu0 %v551_v5 }
 0x104   :  { %554 = vmatpush.msra.mxu1 %v553_v29 }
 0x105   :  { %726 = vmatpush.msrb.mxu0 %v557_v36 }
 0x106   :  { %560 = vmatpush.msra.mxu1 %v559_v42 }
 0x107   :  { %730 = vmatpush.msrb.mxu0 %v563_v15 }
 0x108   :  { %566 = vmatpush.msra.mxu1 %v565_v59 }
 0x109   :  { %734 = vmatpush.msrb.mxu0 %v569_v23 }
 0x10a   :  { %572 = vmatpush.msra.mxu1 %v571_v8  ;;  %736 = vmatmul.f32.vlgmr.msrb.gmra.mxu0 %v1361_v60 }
 0x10b   :  { %574 = vmatmul.f32.vlgmr.msra.gmra.mxu1 %v1361_v60 }
 0x10c   :  { %741 = vmatpush.msrb.mxu1 %v1229_v30 }
 0x10e   :  { %743 = vmatpush.msrb.mxu1 %v1231_v31 }
 0x110   :  { %745 = vmatpush.msrb.mxu1 %v1233_v33 }
 0x112   :  { %747 = vmatpush.msrb.mxu1 %v1235_v40 }
 0x114   :  { %749 = vmatpush.msrb.mxu1 %v1237_v41 }
 0x116   :  { %751 = vmatpush.msrb.mxu1 %v1239_v46 }
 0x118   :  { %753 = vmatpush.msrb.mxu1 %v1251_v58 }
 0x11a   :  { %755 = vmatpush.msrb.mxu1 %v1267_v18 }
 0x11c   :  { %757 = vmatpush.msrb.mxu1 %v1271_v37 }
 0x11e   :  { %759 = vmatpush.msrb.mxu1 %v1290_v55 }
 0x120   :  { %761 = vmatpush.msrb.mxu1 %v1307_v12 }
 0x122   :  { %763 = vmatpush.msrb.mxu1 %v1319_v50 }
 0x124   :  { %765 = vmatpush.msrb.mxu1 %v1327_v11 }
 0x126   :  { %767 = vmatpush.msrb.mxu1 %v1343_v27 }
 0x128   :  { %769 = vmatpush.msrb.mxu1 %v1358_v51 }
 0x12a   :  { %771 = vmatpush.msrb.mxu1 %v1363_v19 }
 0x12b   :  { %773 = vmatmul.f32.vlgmr.msrb.gmra.mxu1 %v1361_v60 }
 0x177   :  { %v474_v31 = vpop.f32.mrf.mxu0 }
 0x178   :  { %v629_v40 = vpop.f32.mrf.mxu2 }
 0x179   :  { %v668_v46 = vpop.f32.mrf.mxu3 }
 0x187   :  { %v737_v54 = vpop.f32.mrf.mxu0 }
 0x188   :  { %v575_v30 = vpop.f32.mrf.mxu1 }
 0x189   :  { %v576_v33 = vadd.f32 %v575_v30, %v474_v31 }
 0x18b   :  { %v630_v41 = vadd.f32 %v629_v40, %v576_v33 }
 0x18d   :  { %v669_v52 = vadd.f32 %v668_v46, %v630_v41 }
 0x18f   :  { %v738_v57 = vadd.f32 %v737_v54, %v669_v52 }
 0x1a8   :  { %v774_v58 = vpop.f32.mrf.mxu1 }
 0x1a9   :  { %v775_v63 = vadd.f32 %v774_v58, %v738_v57 }
 0x1ab   :  { %778 = vst.msk [vmem:[#allocation8] sm:$0xff] %vm777_vm2, %v775_v63 }
 0x1ac   :  { %789 = dma.vmem_to_hbm [thread:$0]  %s785_s23, 128, %s787_s26, [#allocation5]  }
 0x1ad   :  { %915 = dma.done.wait [#allocation5], 128  }
 0x1ae   :  { %916 = vsyncadd [#allocation5], 4294967168 }
 0x1af   :  { %794 = vsyncpa [#allocation4], 1 }
 0x1b0   :  { %795 = vsyncpa [#allocation7], 1 }
 0x1b1   :  { %796 = vsyncpa [#allocation5], 1 }

</bundles_post_ra>
